<compile_context>
chip_gen: v7x
topology: tpu7x:2x2x1
jax: 0.10.0
libtpu: 0.0.40
codegen_flags: <defaults>
</compile_context>

<pallas_src>
import functools

import jax
import jax.numpy as jnp
from jax.experimental import pallas as pl
from jax.experimental.pallas import tpu as pltpu

NEG_INF = -10000000000.0

_HAS_BUFFERED = hasattr(pl, "Buffered")


def _round_up(x, m):
    return (x + m - 1) // m * m


@functools.lru_cache(maxsize=1)
def _vmem_capacity_bytes():
    try:
        return int(pltpu.get_tpu_info().vmem_capacity_bytes)
    except Exception:
        return 64 << 20  # conservative (v7x per-TC) if the query is unavailable


@functools.lru_cache(maxsize=1)
def _is_multi_tc():
    """True if one JAX device spans >1 TensorCore (v4/v5p megacore, v7x)."""
    try:
        kind = jax.devices()[0].device_kind.lower()
        return any(tag in kind for tag in ("v4", "v5p", "7"))
    except Exception:
        return True  # conservative: keeps >=2 grid steps


def _weight_bytes(C, E):
    # fc weight kept twice (original (E,C) + pre-transposed (C,E)), both bf16,
    # two (E,E) bf16 inner weights, two f32 bias rows (tile-padded).
    return 2 * E * C * 2 + 2 * E * E * 2 + 2 * _round_up(E, 128) * 8 * 4


def _pick_tb(B, C, E, out_bytes):
    """VMEM-sized batch tile; >=2 grid steps only where multiple TCs exist."""
    cap = _vmem_capacity_bytes()
    budget = cap * 3 // 4                       # headroom for compiler scratch
    per_row = C * 4 + C * out_bytes             # x (f32 in) + out streams
    avail = budget - 2 * _weight_bytes(C, E)    # worst case: weights double-buffered
    tb_max = max(avail // (2 * per_row), 16)    # 2x = double-buffered x/out tiles
    tb_max = min(tb_max, 4096)
    # TODO(synk): for very large num_classes (tb_max pinned at 16 and still
    # over budget) a C-tiling grid axis is needed; not required at these shapes.

    b_pad128 = _round_up(B, 128)
    if _is_multi_tc() and b_pad128 >= 256:
        # keep at least 2 parallel grid steps so both TensorCores get work
        tb = min(tb_max, _round_up((B + 1) // 2, 128))
    else:
        # single TC: the grid is a serial loop -> one big tile, fewer steps
        tb = min(tb_max, b_pad128)

    if tb >= 128:
        tb = (tb // 128) * 128
    else:
        tb = max(_round_up(tb, 16), 16)
    return int(tb)


def _ae_kernel(x_ref, wt_ref, w_ref, w1_ref, b1_ref, w2_ref, b2_ref, out_ref,
               *, is_excl):
    """Fused autoencoder forward for one batch tile.

    x_ref  : (TB, C)  f32   (0/1 values; cast to bf16 in-kernel for the MXU)
    wt_ref : (C, E)   bf16  pre-transposed fc weight (encode)
    w_ref  : (E, C)   bf16  fc weight, nn.Linear layout (decode)
    w1_ref : (E, E)   bf16  inner layer 1
    b1_ref : (1, E)   f32
    w2_ref : (E, E)   bf16  inner layer 2
    b2_ref : (1, E)   f32
    out_ref: (TB, C)  out dtype
    """
    x_f32 = x_ref[...]                        # (TB, C) f32
    x = x_f32.astype(jnp.bfloat16)            # VPU cast; hides under MXU/DMA

    # embeddings = x @ W.T  (using the pre-transposed copy: no per-step XLU work)
    emb = jnp.dot(x, wt_ref[...], preferred_element_type=jnp.float32)   # (TB,E) f32

    # inner model: 2-layer MLP with ReLU (bf16 MXU inputs, f32 accumulation)
    h = jnp.dot(emb.astype(jnp.bfloat16), w1_ref[...],
                preferred_element_type=jnp.float32) + b1_ref[...]
    h = jnp.maximum(h, 0.0)
    hid = jnp.dot(h.astype(jnp.bfloat16), w2_ref[...],
                  preferred_element_type=jnp.float32) + b2_ref[...]     # (TB,E) f32

    # outputs = hiddens @ W
    out = jnp.dot(hid.astype(jnp.bfloat16), w_ref[...],
                  preferred_element_type=jnp.float32)                   # (TB,C) f32

    if is_excl:
        out = jnp.where(x_f32 > 0, jnp.float32(NEG_INF), out)

    out_ref[...] = out.astype(out_ref.dtype)


def _build_call(B_pad, C, E, tb, is_excl, out_dt):
    kernel = functools.partial(_ae_kernel, is_excl=is_excl)

    wbytes = _weight_bytes(C, E)
    # Single-buffer constant-index weights only when it actually saves real VMEM.
    use_buffered = _HAS_BUFFERED and wbytes > (8 << 20)
    wkw = {"pipeline_mode": pl.Buffered(1)} if use_buffered else {}
    n_w_bufs = 1 if use_buffered else 2

    # Cost estimate: encode (B,C,E) + 2x inner (B,E,E) + decode (B,E,C)
    flops = 4 * B_pad * E * (C + E)
    bytes_accessed = (B_pad * C * 4                       # x (f32)
                      + B_pad * C * out_dt.itemsize       # out
                      + wbytes)

    # VMEM budget: double-buffered x/out tiles + resident weights + live values.
    stream = 2 * (tb * C * 4 + tb * C * out_dt.itemsize)
    interm = 4 * tb * max(E, C) * 4
    working = stream + n_w_bufs * wbytes + interm
    cap = _vmem_capacity_bytes()
    vmem_limit = int(min(cap - (4 << 20), max(32 << 20, working + (8 << 20))))

    return pl.pallas_call(
        kernel,
        out_shape=jax.ShapeDtypeStruct((B_pad, C), out_dt),
        grid_spec=pltpu.PrefetchScalarGridSpec(
            num_scalar_prefetch=0,
            grid=(B_pad // tb,),
            in_specs=[
                pl.BlockSpec((tb, C), lambda i: (i, 0)),          # x: batch-tiled
                pl.BlockSpec((C, E), lambda i: (0, 0), **wkw),    # W.T (encode)
                pl.BlockSpec((E, C), lambda i: (0, 0), **wkw),    # W   (decode)
                pl.BlockSpec((E, E), lambda i: (0, 0), **wkw),    # inner w1
                pl.BlockSpec((1, E), lambda i: (0, 0), **wkw),    # inner b1
                pl.BlockSpec((E, E), lambda i: (0, 0), **wkw),    # inner w2
                pl.BlockSpec((1, E), lambda i: (0, 0), **wkw),    # inner b2
            ],
            out_specs=pl.BlockSpec((tb, C), lambda i: (i, 0)),
        ),
        compiler_params=pltpu.CompilerParams(
            dimension_semantics=("parallel",),
            vmem_limit_bytes=vmem_limit,
        ),
        cost_estimate=pl.CostEstimate(
            flops=flops, transcendentals=0, bytes_accessed=bytes_accessed),
    )


@functools.partial(jax.jit, static_argnames=("is_excl", "out_dtype", "tb"))
def _forward_jit(x, w, w1, b1, w2, b2, *, is_excl, out_dtype, tb):
    B, C = x.shape
    E = w.shape[0]
    out_dt = jnp.dtype(out_dtype)

    B_pad = _round_up(B, tb)
    x_f = x.astype(jnp.float32)
    if B_pad != B:
        # TODO(synk): up to tb-1 padded rows are computed and sliced off; pick a
        # tb dividing B if ragged-batch waste ever matters.
        x_f = jnp.pad(x_f, ((0, B_pad - B), (0, 0)))

    # TODO(synk): in a serving loop, cache these bf16 / transposed copies once
    # instead of re-deriving them per call.
    w_bf = w.astype(jnp.bfloat16)            # (E, C) decode
    wt_bf = w_bf.T                           # (C, E) encode (pre-transposed once)
    w1_bf = w1.astype(jnp.bfloat16)
    w2_bf = w2.astype(jnp.bfloat16)
    b1_f = b1.astype(jnp.float32).reshape(1, E)
    b2_f = b2.astype(jnp.float32).reshape(1, E)

    out = _build_call(B_pad, C, E, tb, is_excl, out_dt)(
        x_f, wt_bf, w_bf, w1_bf, b1_f, w2_bf, b2_f)
    return out[:B] if B_pad != B else out


def autoencoder_forward(x, w, w1, b1, w2, b2, *, is_excl, out_dtype=jnp.float32,
                        tb=None):
    """x: (B, C) 0/1-valued. Returns (B, C) logits (f32 by default)."""
    B, C = x.shape
    E = w.shape[0]
    assert w.shape == (E, C)
    out_dt = jnp.dtype(out_dtype)
    if tb is None:
        tb = _pick_tb(B, C, E, out_dt.itemsize)
    return _forward_jit(x, w, w1, b1, w2, b2,
                        is_excl=is_excl, out_dtype=out_dt.name, tb=int(tb))


def reference_forward_f32(x, w, w1, b1, w2, b2, *, is_excl):
    emb = x @ w.T
    h = jnp.maximum(emb @ w1 + b1, 0.0)
    hid = h @ w2 + b2
    out = hid @ w
    if is_excl:
        out = jnp.where(x > 0.0, jnp.float32(NEG_INF), out)
    return out


def reference_forward_bf16(x, w, w1, b1, w2, b2, *, is_excl):
    """Reference with the same bf16-input / f32-accumulate recipe as the kernel."""
    xb = x.astype(jnp.bfloat16)
    wb = w.astype(jnp.bfloat16)
    emb = jnp.dot(xb, wb.T, preferred_element_type=jnp.float32)
    h = jnp.maximum(jnp.dot(emb.astype(jnp.bfloat16), w1.astype(jnp.bfloat16),
                            preferred_element_type=jnp.float32) + b1, 0.0)
    hid = jnp.dot(h.astype(jnp.bfloat16), w2.astype(jnp.bfloat16),
                  preferred_element_type=jnp.float32) + b2
    out = jnp.dot(hid.astype(jnp.bfloat16), wb, preferred_element_type=jnp.float32)
    if is_excl:
        out = jnp.where(x > 0.0, jnp.float32(NEG_INF), out)
    return out


if __name__ == "__main__":
    # Small, TPU-friendly demo shapes consistent with the module.
    B, NUM_CLASSES, EMB_DIM = 256, 128, 128
    IS_EXCL = True

    key = jax.random.PRNGKey(0)
    k_x, k_w, k_w1, k_b1, k_w2, k_b2 = jax.random.split(key, 6)

    # inputs are boolean in the torch module; forward uses inputs.float()
    x_bool = jax.random.bernoulli(k_x, 0.3, (B, NUM_CLASSES))
    x = x_bool.astype(jnp.float32)

    # fc: Linear(num_classes, emb_dim, bias=False) -> weight (emb_dim, num_classes)
    w = jax.random.normal(k_w, (EMB_DIM, NUM_CLASSES), jnp.float32) * 0.05

    # TODO(synk): get_model/config['inner'] is unspecified; inner is synthesized
    # deterministically as a 2-layer MLP (emb_dim -> emb_dim -> emb_dim, ReLU).
    w1 = jax.random.normal(k_w1, (EMB_DIM, EMB_DIM), jnp.float32) * 0.05
    b1 = jax.random.normal(k_b1, (1, EMB_DIM), jnp.float32) * 0.01
    w2 = jax.random.normal(k_w2, (EMB_DIM, EMB_DIM), jnp.float32) * 0.05
    b2 = jax.random.normal(k_b2, (1, EMB_DIM), jnp.float32) * 0.01

    out = autoencoder_forward(x, w, w1, b1, w2, b2, is_excl=IS_EXCL)
    out = jax.block_until_ready(out)
    assert out.shape == (B, NUM_CLASSES)
    assert out.dtype == jnp.float32

    # Tight check against a reference using the same bf16-in / f32-acc recipe.
    ref_bf16 = reference_forward_bf16(x, w, w1, b1, w2, b2, is_excl=IS_EXCL)
    assert jnp.allclose(out, ref_bf16, atol=2e-3, rtol=2e-3), "mismatch vs bf16 reference"

    # Loose sanity check against the pure f32 reference (bf16 rounding tolerance).
    ref_f32 = reference_forward_f32(x, w, w1, b1, w2, b2, is_excl=IS_EXCL)
    assert jnp.allclose(out, ref_f32, atol=5e-2, rtol=5e-2), "mismatch vs f32 reference"

    print("KERNEL_OK")
</pallas_src>

<mosaic_0001>
module attributes {stable_mosaic.version = 11 : i64} {
  func.func @_ae_kernel(%arg0: i32, %arg1: memref<256x128xf32, #tpu.memory_space<vmem>>, %arg2: memref<128x128xbf16, #tpu.memory_space<vmem>>, %arg3: memref<128x128xbf16, #tpu.memory_space<vmem>>, %arg4: memref<128x128xbf16, #tpu.memory_space<vmem>>, %arg5: memref<1x128xf32, #tpu.memory_space<vmem>>, %arg6: memref<128x128xbf16, #tpu.memory_space<vmem>>, %arg7: memref<1x128xf32, #tpu.memory_space<vmem>>, %arg8: memref<256x128xf32, #tpu.memory_space<vmem>>) attributes {dimension_semantics = [#tpu.dimension_semantics<parallel>], iteration_bounds = array<i64: 1>, scalar_prefetch = 0 : i64, scratch_operands = 0 : i64, tpu.core_type = #tpu.core_type<tc>, window_params = [{transform_indices = @transform_0, window_bounds = array<i64: 256, 128>}, {pipeline_mode = #tpu.pipeline_mode<synchronous>, transform_indices = @transform_1, window_bounds = array<i64: 128, 128>}, {pipeline_mode = #tpu.pipeline_mode<synchronous>, transform_indices = @transform_2, window_bounds = array<i64: 128, 128>}, {pipeline_mode = #tpu.pipeline_mode<synchronous>, transform_indices = @transform_3, window_bounds = array<i64: 128, 128>}, {pipeline_mode = #tpu.pipeline_mode<synchronous>, transform_indices = @transform_4, window_bounds = array<i64: 1, 128>}, {pipeline_mode = #tpu.pipeline_mode<synchronous>, transform_indices = @transform_5, window_bounds = array<i64: 128, 128>}, {pipeline_mode = #tpu.pipeline_mode<synchronous>, transform_indices = @transform_6, window_bounds = array<i64: 1, 128>}, {transform_indices = @transform_7, window_bounds = array<i64: 256, 128>}]} {
    %c0 = arith.constant 0 : index
    %c0_0 = arith.constant 0 : index
    %0 = vector.load %arg1[%c0, %c0_0] : memref<256x128xf32, #tpu.memory_space<vmem>>, vector<256x128xf32>
    %1 = arith.truncf %0 : vector<256x128xf32> to vector<256x128xbf16>
    %c0_1 = arith.constant 0 : index
    %c0_2 = arith.constant 0 : index
    %2 = vector.load %arg2[%c0_1, %c0_2] : memref<128x128xbf16, #tpu.memory_space<vmem>>, vector<128x128xbf16>
    %cst = arith.constant dense<0.000000e+00> : vector<256x128xf32>
    %3 = tpu.matmul %1, %2, %cst {dimension_numbers = #tpu.dot_dimension_numbers<[1], [0], [0], [1], [0, 0, 1, 1], [], []>} : vector<256x128xbf16>, vector<128x128xbf16>, vector<256x128xf32> -> vector<256x128xf32>
    %4 = arith.truncf %3 : vector<256x128xf32> to vector<256x128xbf16>
    %c0_3 = arith.constant 0 : index
    %c0_4 = arith.constant 0 : index
    %5 = vector.load %arg4[%c0_3, %c0_4] : memref<128x128xbf16, #tpu.memory_space<vmem>>, vector<128x128xbf16>
    %cst_5 = arith.constant dense<0.000000e+00> : vector<256x128xf32>
    %6 = tpu.matmul %4, %5, %cst_5 {dimension_numbers = #tpu.dot_dimension_numbers<[1], [0], [0], [1], [0, 0, 1, 1], [], []>} : vector<256x128xbf16>, vector<128x128xbf16>, vector<256x128xf32> -> vector<256x128xf32>
    %c0_6 = arith.constant 0 : index
    %c0_7 = arith.constant 0 : index
    %7 = vector.load %arg5[%c0_6, %c0_7] : memref<1x128xf32, #tpu.memory_space<vmem>>, vector<1x128xf32>
    %8 = vector.broadcast %7 : vector<1x128xf32> to vector<256x128xf32>
    %9 = arith.addf %6, %8 : vector<256x128xf32>
    %cst_8 = arith.constant 0.000000e+00 : f32
    %10 = vector.broadcast %cst_8 : f32 to vector<256x128xf32>
    %11 = arith.maximumf %9, %10 : vector<256x128xf32>
    %12 = arith.truncf %11 : vector<256x128xf32> to vector<256x128xbf16>
    %c0_9 = arith.constant 0 : index
    %c0_10 = arith.constant 0 : index
    %13 = vector.load %arg6[%c0_9, %c0_10] : memref<128x128xbf16, #tpu.memory_space<vmem>>, vector<128x128xbf16>
    %cst_11 = arith.constant dense<0.000000e+00> : vector<256x128xf32>
    %14 = tpu.matmul %12, %13, %cst_11 {dimension_numbers = #tpu.dot_dimension_numbers<[1], [0], [0], [1], [0, 0, 1, 1], [], []>} : vector<256x128xbf16>, vector<128x128xbf16>, vector<256x128xf32> -> vector<256x128xf32>
    %c0_12 = arith.constant 0 : index
    %c0_13 = arith.constant 0 : index
    %15 = vector.load %arg7[%c0_12, %c0_13] : memref<1x128xf32, #tpu.memory_space<vmem>>, vector<1x128xf32>
    %16 = vector.broadcast %15 : vector<1x128xf32> to vector<256x128xf32>
    %17 = arith.addf %14, %16 : vector<256x128xf32>
    %18 = arith.truncf %17 : vector<256x128xf32> to vector<256x128xbf16>
    %c0_14 = arith.constant 0 : index
    %c0_15 = arith.constant 0 : index
    %19 = vector.load %arg3[%c0_14, %c0_15] : memref<128x128xbf16, #tpu.memory_space<vmem>>, vector<128x128xbf16>
    %cst_16 = arith.constant dense<0.000000e+00> : vector<256x128xf32>
    %20 = tpu.matmul %18, %19, %cst_16 {dimension_numbers = #tpu.dot_dimension_numbers<[1], [0], [0], [1], [0, 0, 1, 1], [], []>} : vector<256x128xbf16>, vector<128x128xbf16>, vector<256x128xf32> -> vector<256x128xf32>
    %cst_17 = arith.constant 0.000000e+00 : f32
    %21 = vector.broadcast %cst_17 : f32 to vector<256x128xf32>
    %22 = arith.cmpf ogt, %0, %21 : vector<256x128xf32>
    %cst_18 = arith.constant -1.000000e+10 : f32
    %23 = vector.broadcast %cst_18 : f32 to vector<256x128xf32>
    %24 = arith.select %22, %23, %20 : vector<256x128xi1>, vector<256x128xf32>
    %c0_19 = arith.constant 0 : index
    %c0_20 = arith.constant 0 : index
    %25 = vector.load %arg8[%c0_19, %c0_20] : memref<256x128xf32, #tpu.memory_space<vmem>>, vector<256x128xf32>
    tpu.vector_store %arg8[%c0_19, %c0_20], %24 {strides = array<i32>} : memref<256x128xf32, #tpu.memory_space<vmem>>, vector<256x128xf32>,
    return
  }
  func.func @transform_0(%arg0: i32) -> (i32, i32) {
    %c0_i32 = arith.constant 0 : i32
    %c0_i32_0 = arith.constant 0 : i32
    return %arg0, %c0_i32 : i32, i32
  }
  func.func @transform_1(%arg0: i32) -> (i32, i32) {
    %c0_i32 = arith.constant 0 : i32
    %c0_i32_0 = arith.constant 0 : i32
    %c0_i32_1 = arith.constant 0 : i32
    return %c0_i32, %c0_i32_0 : i32, i32
  }
  func.func @transform_2(%arg0: i32) -> (i32, i32) {
    %c0_i32 = arith.constant 0 : i32
    %c0_i32_0 = arith.constant 0 : i32
    %c0_i32_1 = arith.constant 0 : i32
    return %c0_i32, %c0_i32_0 : i32, i32
  }
  func.func @transform_3(%arg0: i32) -> (i32, i32) {
    %c0_i32 = arith.constant 0 : i32
    %c0_i32_0 = arith.constant 0 : i32
    %c0_i32_1 = arith.constant 0 : i32
    return %c0_i32, %c0_i32_0 : i32, i32
  }
  func.func @transform_4(%arg0: i32) -> (i32, i32) {
    %c0_i32 = arith.constant 0 : i32
    %c0_i32_0 = arith.constant 0 : i32
    %c0_i32_1 = arith.constant 0 : i32
    return %c0_i32, %c0_i32_0 : i32, i32
  }
  func.func @transform_5(%arg0: i32) -> (i32, i32) {
    %c0_i32 = arith.constant 0 : i32
    %c0_i32_0 = arith.constant 0 : i32
    %c0_i32_1 = arith.constant 0 : i32
    return %c0_i32, %c0_i32_0 : i32, i32
  }
  func.func @transform_6(%arg0: i32) -> (i32, i32) {
    %c0_i32 = arith.constant 0 : i32
    %c0_i32_0 = arith.constant 0 : i32
    %c0_i32_1 = arith.constant 0 : i32
    return %c0_i32, %c0_i32_0 : i32, i32
  }
  func.func @transform_7(%arg0: i32) -> (i32, i32) {
    %c0_i32 = arith.constant 0 : i32
    %c0_i32_0 = arith.constant 0 : i32
    return %arg0, %c0_i32 : i32, i32
  }
}

</mosaic_0001>

<bundles_post_ra>
// kernel: _forward_jit.1
= control target key start
LH: loop header
LB: loop body
LE: loop exit
PB: predicated region body
PF: predicated region fallthrough
CT: control target
= control target key end

     0   :  { %s2012_s0 = inlined_call_operand.vmem [shape: f32[256,128], index: 0, kind: input, shape index: {}]   ;;  %s2013_s1 = inlined_call_operand.vmem [shape: bf16[128,128], index: 1, kind: input, shape index: {}]   ;;  %s2014_s2 = inlined_call_operand.vmem [shape: bf16[128,128], index: 2, kind: input, shape index: {}]   ;;  %s2015_s3 = inlined_call_operand.vmem [shape: bf16[128,128], index: 3, kind: input, shape index: {}]   ;;  %s2016_s4 = inlined_call_operand.vmem [shape: f32[1,128], index: 4, kind: input, shape index: {}]   ;;  %s2017_s5 = inlined_call_operand.vmem [shape: bf16[128,128], index: 5, kind: input, shape index: {}]   ;;  %s2018_s6 = inlined_call_operand.vmem [shape: f32[1,128], index: 6, kind: input, shape index: {}]   ;;  %s2019_s7 = inlined_call_operand.hbm [shape: f32[256,128], index: 7, kind: output, shape index: {}]  }
   0x1   :  { %v1507_v0 = vld [vmem:[%s2013_s1] sm:$0xff]   ;;  %v1508_v1 = vld [vmem:[%s2013_s1 + $0x8] sm:$0xff]   ;;  %v1509_v2 = vld [vmem:[%s2013_s1 + $0x10] sm:$0xff]  }
   0x2   :  { %1312 = vmatprep.subr.bf16.mxu0 %v1507_v0  ;;  %v1510_v3 = vld [vmem:[%s2013_s1 + $0x18] sm:$0xff]   ;;  %v1621_v4 = vld [vmem:[%s2012_s0] sm:$0xff]  ;;  %v1626_v5 = vld [vmem:[%s2012_s0 + $0x8] sm:$0xff] }
   0x3   :  { %1313 = vmatpush3.bf16.msra.mxu0 %v1507_v0  ;;  %v60_v6 = vpack.c.bf16 %v1626_v5, %v1621_v4  ;;  %v1511_v7 = vld [vmem:[%s2013_s1 + $0x20] sm:$0xff]   ;;  %v1512_v8 = vld [vmem:[%s2013_s1 + $0x28] sm:$0xff]   ;;  %v1513_v9 = vld [vmem:[%s2013_s1 + $0x30] sm:$0xff]  }
   0x4   :  { %1314 = vmatprep.subr.bf16.mxu0 %v1508_v1  ;;  %v1515_v10 = vld [vmem:[%s2015_s3] sm:$0xff]   ;;  %v1516_v11 = vld [vmem:[%s2015_s3 + $0x8] sm:$0xff]   ;;  %v1517_v12 = vld [vmem:[%s2015_s3 + $0x10] sm:$0xff]  }
   0x5   :  { %1328 = vmatprep.mubr.bf16.mxu0 %v60_v6  ;;  %1360 = vmatprep.subr.bf16.mxu1 %v1515_v10  ;;  %v1514_v13 = vld [vmem:[%s2013_s1 + $0x38] sm:$0xff]   ;;  %v1654_v14 = vld [vmem:[%s2012_s0 + $0x10] sm:$0xff]  ;;  %v1667_v17 = vld [vmem:[%s2012_s0 + $0x20] sm:$0xff] }
   0x6   :  { %1361 = vmatpush3.bf16.msra.mxu1 %v1515_v10  ;;  %v1659_v15 = vld [vmem:[%s2012_s0 + $0x18] sm:$0xff]  ;;  %v1672_v18 = vld [vmem:[%s2012_s0 + $0x28] sm:$0xff]  ;;  %v1519_v19 = vld [vmem:[%s2015_s3 + $0x20] sm:$0xff]  }
   0x7   :  { %1315 = vmatpush3.bf16.msra.mxu0 %v1508_v1  ;;  %1362 = vmatprep.subr.bf16.mxu1 %v1516_v11  ;;  %v1518_v16 = vld [vmem:[%s2015_s3 + $0x18] sm:$0xff]   ;;  %v61_v20 = vpack.c.bf16 %v1659_v15, %v1654_v14  ;;  %v62_v21 = vpack.c.bf16 %v1672_v18, %v1667_v17  ;;  %v1684_v22 = vld [vmem:[%s2012_s0 + $0x30] sm:$0xff]  ;;  %v1520_v24 = vld [vmem:[%s2015_s3 + $0x28] sm:$0xff]  }
   0x8   :  { %1316 = vmatprep.subr.bf16.mxu0 %v1509_v2  ;;  %v1689_v23 = vld [vmem:[%s2012_s0 + $0x38] sm:$0xff]  ;;  %v1697_v25 = vld [vmem:[%s2012_s0 + $0x40] sm:$0xff]  ;;  %v1702_v26 = vld [vmem:[%s2012_s0 + $0x48] sm:$0xff] }
   0xa   :  { %1363 = vmatpush3.bf16.msra.mxu1 %v1516_v11 }
   0xb   :  { %1317 = vmatpush3.bf16.msra.mxu0 %v1509_v2  ;;  %1364 = vmatprep.subr.bf16.mxu1 %v1517_v12 }
   0xc   :  { %1318 = vmatprep.subr.bf16.mxu0 %v1510_v3 }
   0xe   :  { %1365 = vmatpush3.bf16.msra.mxu1 %v1517_v12 }
   0xf   :  { %1319 = vmatpush3.bf16.msra.mxu0 %v1510_v3  ;;  %1366 = vmatprep.subr.bf16.mxu1 %v1518_v16 }
  0x10   :  { %1320 = vmatprep.subr.bf16.mxu0 %v1511_v7 }
  0x12   :  { %1367 = vmatpush3.bf16.msra.mxu1 %v1518_v16 }
  0x13   :  { %1321 = vmatpush3.bf16.msra.mxu0 %v1511_v7  ;;  %1368 = vmatprep.subr.bf16.mxu1 %v1519_v19 }
  0x14   :  { %1322 = vmatprep.subr.bf16.mxu0 %v1512_v8 }
  0x17   :  { %1323 = vmatpush3.bf16.msra.mxu0 %v1512_v8 }
  0x18   :  { %1324 = vmatprep.subr.bf16.mxu0 %v1513_v9 }
  0x1b   :  { %1325 = vmatpush3.bf16.msra.mxu0 %v1513_v9 }
  0x1c   :  { %1326 = vmatprep.subr.bf16.mxu0 %v1514_v13 }
  0x1f   :  { %1327 = vmatpush3.bf16.msra.mxu0 %v1514_v13 }
  0x22   :  { %1329 = vmatmul.mubr.bf16.vlgmr.msra.gmra.mrb[0].mxu0 %v61_v20 }
  0x23   :  { %1332 = vmatprep.mubr.bf16.mxu0 %v62_v21 }
  0x24   :  { %12 = vsyncpa [#allocation3], 0  ;;  %v63_v27 = vpack.c.bf16 %v1689_v23, %v1684_v22  ;;  %1369 = vmatpush3.bf16.msra.mxu1 %v1519_v19  ;;  %v64_v28 = vpack.c.bf16 %v1702_v26, %v1697_v25  ;;  %v1521_v29 = vld [vmem:[%s2015_s3 + $0x30] sm:$0xff]   ;;  %v1719_v31 = vld [vmem:[%s2012_s0 + $0x58] sm:$0xff]  ;;  %vm1072_vm0 = vcmp.gt.f32.partialorder %v1654_v14, 0.0  ;;  %vm1070_vm1 = vcmp.gt.f32.partialorder %v1621_v4, 0.0 }
  0x25   :  { %1370 = vmatprep.subr.bf16.mxu1 %v1520_v24  ;;  %v1714_v30 = vld [vmem:[%s2012_s0 + $0x50] sm:$0xff]  ;;  %v1724_v32 = vld [vmem:[%s2012_s0 + $0x60] sm:$0xff]  ;;  %v1729_v33 = vld [vmem:[%s2012_s0 + $0x68] sm:$0xff]  ;;  %vm1073_vm2 = vcmp.gt.f32.partialorder %v1659_v15, 0.0  ;;  %vm1071_vm3 = vcmp.gt.f32.partialorder %v1626_v5, 0.0  ;;  %vm1076_vm4 = vcmp.gt.f32.partialorder %v1684_v22, 0.0 }
  0x26   :  { %v65_v34 = vpack.c.bf16 %v1719_v31, %v1714_v30  ;;  %v66_v35 = vpack.c.bf16 %v1729_v33, %v1724_v32  ;;  %v1738_v36 = vld [vmem:[%s2012_s0 + $0x70] sm:$0xff]  ;;  %v1743_v37 = vld [vmem:[%s2012_s0 + $0x78] sm:$0xff]  ;;  %v1748_v38 = vld [vmem:[%s2012_s0 + $0x80] sm:$0xff]  ;;  %vm1074_vm5 = vcmp.gt.f32.partialorder %v1667_v17, 0.0  ;;  %vm1077_vm6 = vcmp.gt.f32.partialorder %v1689_v23, 0.0 }
  0x27   :  { %v1753_v39 = vld [vmem:[%s2012_s0 + $0x88] sm:$0xff]  ;;  %v67_v40 = vpack.c.bf16 %v1743_v37, %v1738_v36  ;;  %v1762_v42 = vld [vmem:[%s2012_s0 + $0x90] sm:$0xff]  ;;  %v1767_v43 = vld [vmem:[%s2012_s0 + $0x98] sm:$0xff]  ;;  %vm1075_vm7 = vcmp.gt.f32.partialorder %v1672_v18, 0.0  ;;  %vm1080_vm8 = vcmp.gt.f32.partialorder %v1714_v30, 0.0  ;;  %vm1078_vm9 = vcmp.gt.f32.partialorder %v1697_v25, 0.0 }
  0x28   :  { %1371 = vmatpush3.bf16.msra.mxu1 %v1520_v24  ;;  %v68_v41 = vpack.c.bf16 %v1753_v39, %v1748_v38  ;;  %v1772_v44 = vld [vmem:[%s2012_s0 + $0xa0] sm:$0xff]  ;;  %v1777_v45 = vld [vmem:[%s2012_s0 + $0xa8] sm:$0xff]  ;;  %v69_v46 = vpack.c.bf16 %v1767_v43, %v1762_v42  ;;  %v1786_v48 = vld [vmem:[%s2012_s0 + $0xb0] sm:$0xff]  ;;  %vm1081_vm10 = vcmp.gt.f32.partialorder %v1719_v31, 0.0  ;;  %vm1079_vm11 = vcmp.gt.f32.partialorder %v1702_v26, 0.0 }
  0x29   :  { %1372 = vmatprep.subr.bf16.mxu1 %v1521_v29  ;;  %v70_v47 = vpack.c.bf16 %v1777_v45, %v1772_v44  ;;  %v1791_v49 = vld [vmem:[%s2012_s0 + $0xb8] sm:$0xff]  ;;  %v1796_v50 = vld [vmem:[%s2012_s0 + $0xc0] sm:$0xff]  ;;  %v1801_v51 = vld [vmem:[%s2012_s0 + $0xc8] sm:$0xff]  ;;  %vm1084_vm12 = vcmp.gt.f32.partialorder %v1738_v36, 0.0  ;;  %vm1082_vm13 = vcmp.gt.f32.partialorder %v1724_v32, 0.0  ;;  %vm1085_vm14 = vcmp.gt.f32.partialorder %v1743_v37, 0.0 }
  0x2a   :  { %1333 = vmatmul.mubr.bf16.gmra.mrb[4].mxu0 %v63_v27  ;;  %v71_v52 = vpack.c.bf16 %v1791_v49, %v1786_v48  ;;  %v72_v53 = vpack.c.bf16 %v1801_v51, %v1796_v50  ;;  %v1810_v54 = vld [vmem:[%s2012_s0 + $0xd0] sm:$0xff]  ;;  %v1815_v55 = vld [vmem:[%s2012_s0 + $0xd8] sm:$0xff]  ;;  %v1820_v56 = vld [vmem:[%s2012_s0 + $0xe0] sm:$0xff]  ;;  %vm1083_vm15 = vcmp.gt.f32.partialorder %v1729_v33, 0.0 }
  0x2b   :  { %1336 = vmatprep.mubr.bf16.mxu0 %v64_v28  ;;  %v1825_v57 = vld [vmem:[%s2012_s0 + $0xe8] sm:$0xff]  ;;  %v73_v58 = vpack.c.bf16 %v1815_v55, %v1810_v54  ;;  %v1834_v60 = vld [vmem:[%s2012_s0 + $0xf0] sm:$0xff]  ;;  %v1839_v61 = vld [vmem:[%s2012_s0 + $0xf8] sm:$0xff] }
  0x2c   :  { %1373 = vmatpush3.bf16.msra.mxu1 %v1521_v29  ;;  %v74_v59 = vpack.c.bf16 %v1825_v57, %v1820_v56  ;;  %v75_v62 = vpack.c.bf16 %v1839_v61, %v1834_v60  ;;  %v1522_v63 = vld [vmem:[%s2015_s3 + $0x38] sm:$0xff]   ;;  %v1523_v0 = vld [vmem:[%s2017_s5] sm:$0xff]   ;;  %v1524_v1 = vld [vmem:[%s2017_s5 + $0x8] sm:$0xff]  }
  0x2d   :  { %1374 = vmatprep.subr.bf16.mxu1 %v1522_v63  ;;  %1408 = vmatprep.subr.bf16.mxu0 %v1523_v0  ;;  %v1525_v2 = vld [vmem:[%s2017_s5 + $0x10] sm:$0xff]   ;;  %v1526_v3 = vld [vmem:[%s2017_s5 + $0x18] sm:$0xff]   ;;  %v1527_v6 = vld [vmem:[%s2017_s5 + $0x20] sm:$0xff]  }
  0x2e   :  { %1409 = vmatpush3.bf16.msra.mxu0 %v1523_v0  ;;  %v1528_v7 = vld [vmem:[%s2017_s5 + $0x28] sm:$0xff]   ;;  %v1529_v8 = vld [vmem:[%s2017_s5 + $0x30] sm:$0xff]  }
  0x2f   :  { %1410 = vmatprep.subr.bf16.mxu0 %v1524_v1 }
  0x30   :  { %1375 = vmatpush3.bf16.msra.mxu1 %v1522_v63 }
  0x32   :  { %1337 = vmatmul.mubr.bf16.gmra.mrb[8].mxu0 %v65_v34 }
  0x33   :  { %1340 = vmatprep.mubr.bf16.mxu0 %v66_v35  ;;  %1411 = vmatpush3.bf16.msra.mxu0 %v1524_v1 }
  0x34   :  { %1412 = vmatprep.subr.bf16.mxu0 %v1525_v2 }
  0x37   :  { %1413 = vmatpush3.bf16.msra.mxu0 %v1525_v2 }
  0x38   :  { %1414 = vmatprep.subr.bf16.mxu0 %v1526_v3 }
  0x3a   :  { %1341 = vmatmul.mubr.bf16.gmra.mrb[12].mxu0 %v67_v40 }
  0x3b   :  { %1344 = vmatprep.mubr.bf16.mxu0 %v68_v41  ;;  %1415 = vmatpush3.bf16.msra.mxu0 %v1526_v3 }
  0x3c   :  { %1416 = vmatprep.subr.bf16.mxu0 %v1527_v6 }
  0x3f   :  { %1417 = vmatpush3.bf16.msra.mxu0 %v1527_v6 }
  0x40   :  { %1418 = vmatprep.subr.bf16.mxu0 %v1528_v7 }
  0x42   :  { %1345 = vmatmul.mubr.bf16.gmra.mrb[16].mxu0 %v69_v46 }
  0x43   :  { %1348 = vmatprep.mubr.bf16.mxu0 %v70_v47  ;;  %1419 = vmatpush3.bf16.msra.mxu0 %v1528_v7 }
  0x44   :  { %1420 = vmatprep.subr.bf16.mxu0 %v1529_v8 }
  0x47   :  { %1421 = vmatpush3.bf16.msra.mxu0 %v1529_v8 }
  0x4a   :  { %1349 = vmatmul.mubr.bf16.gmra.mrb[20].mxu0 %v71_v52 }
  0x4b   :  { %1352 = vmatprep.mubr.bf16.mxu0 %v72_v53 }
  0x52   :  { %1353 = vmatmul.mubr.bf16.gmra.mrb[24].mxu0 %v73_v58 }
  0x53   :  { %1356 = vmatprep.mubr.bf16.mxu0 %v74_v59 }
  0x5a   :  { %1357 = vmatmul.mubr.bf16.gmra.mrb[28].mxu0 %v75_v62 }
  0xf5   :  { %v1330_v9 = vpop.f32.mrb[0].mxu0 }
  0xf6   :  { %v174_v10 = vpop.f32.mrb[1].mxu0 }
  0xf7   :  { %v1331_v11 = vpop.f32.mrb[2].mxu0 }
  0xf8   :  { %v302_v12 = vpack.c.bf16 %v1331_v11, %v1330_v9  ;;  %v177_v13 = vpop.f32.mrb[3].mxu0 }
  0xf9   :  { %v301_v16 = vpack.c.bf16 %v177_v13, %v174_v10 }
  0xfb   :  { %1376 = vmatprep.mubr.bf16.mxu1 %v301_v16 }
  0xfc   :  { %1377 = vmatmul.mubr.bf16.vlgmr.msra.gmra.mrb[0].mxu1 %v302_v12 }
  0xfd   :  { %v1334_v19 = vpop.f32.mrb[4].mxu0 }
  0xfe   :  { %v190_v20 = vpop.f32.mrb[5].mxu0 }
  0xff   :  { %v1335_v21 = vpop.f32.mrb[6].mxu0 }
 0x100   :  { %v304_v24 = vpack.c.bf16 %v1335_v21, %v1334_v19  ;;  %v193_v27 = vpop.f32.mrb[7].mxu0 }
 0x101   :  { %v303_v28 = vpack.c.bf16 %v193_v27, %v190_v20 }
 0x103   :  { %1380 = vmatprep.mubr.bf16.mxu1 %v303_v28 }
 0x104   :  { %1381 = vmatmul.mubr.bf16.gmra.mrb[4].mxu1 %v304_v24 }
 0x105   :  { %v1338_v29 = vpop.f32.mrb[8].mxu0 }
 0x106   :  { %v206_v34 = vpop.f32.mrb[9].mxu0 }
 0x107   :  { %v1339_v35 = vpop.f32.mrb[10].mxu0 }
 0x108   :  { %v306_v40 = vpack.c.bf16 %v1339_v35, %v1338_v29  ;;  %v209_v41 = vpop.f32.mrb[11].mxu0 }
 0x109   :  { %v305_v46 = vpack.c.bf16 %v209_v41, %v206_v34  ;;  %v1530_v41 = vld [vmem:[%s2017_s5 + $0x38] sm:$0xff]  }
 0x10a   :  { %1422 = vmatprep.subr.bf16.mxu0 %v1530_v41 }
 0x10b   :  { %1384 = vmatprep.mubr.bf16.mxu1 %v305_v46  ;;  %1423 = vmatpush3.bf16.msra.mxu0 %v1530_v41  ;;  %v1531_v46 = vld [vmem:[%s2014_s2] sm:$0xff]  }
 0x10c   :  { %1385 = vmatmul.mubr.bf16.gmra.mrb[8].mxu1 %v306_v40  ;;  %1456 = vmatprep.subr.bf16.mxu1 %v1531_v46 }
 0x10d   :  { %v1342_v47 = vpop.f32.mrb[12].mxu0  ;;  %1457 = vmatpush3.bf16.msra.mxu1 %v1531_v46 }
 0x10e   :  { %v222_v52 = vpop.f32.mrb[13].mxu0 }
 0x10f   :  { %v1343_v53 = vpop.f32.mrb[14].mxu0 }
 0x110   :  { %v308_v58 = vpack.c.bf16 %v1343_v53, %v1342_v47  ;;  %v225_v59 = vpop.f32.mrb[15].mxu0  ;;  %v1532_v47 = vld [vmem:[%s2014_s2 + $0x8] sm:$0xff]   ;;  %v1534_v53 = vld [vmem:[%s2014_s2 + $0x18] sm:$0xff]  }
 0x111   :  { %v307_v62 = vpack.c.bf16 %v225_v59, %v222_v52  ;;  %1458 = vmatprep.subr.bf16.mxu1 %v1532_v47  ;;  %v1533_v52 = vld [vmem:[%s2014_s2 + $0x10] sm:$0xff]   ;;  %v1536_v59 = vld [vmem:[%s2014_s2 + $0x28] sm:$0xff]  }
 0x112   :  { %1459 = vmatpush3.bf16.msra.mxu1 %v1532_v47 }
 0x113   :  { %1388 = vmatprep.mubr.bf16.mxu1 %v307_v62  ;;  %1460 = vmatprep.subr.bf16.mxu1 %v1533_v52  ;;  %v1537_v62 = vld [vmem:[%s2014_s2 + $0x30] sm:$0xff]  }
 0x114   :  { %1389 = vmatmul.mubr.bf16.gmra.mrb[12].mxu1 %v308_v58  ;;  %v1535_v58 = vld [vmem:[%s2014_s2 + $0x20] sm:$0xff]  }
 0x115   :  { %v1346_v63 = vpop.f32.mrb[16].mxu0 }
 0x116   :  { %v238_v0 = vpop.f32.mrb[17].mxu0  ;;  %1461 = vmatpush3.bf16.msra.mxu1 %v1533_v52 }
 0x117   :  { %v1347_v1 = vpop.f32.mrb[18].mxu0  ;;  %1462 = vmatprep.subr.bf16.mxu1 %v1534_v53 }
 0x118   :  { %v310_v2 = vpack.c.bf16 %v1347_v1, %v1346_v63  ;;  %v241_v3 = vpop.f32.mrb[19].mxu0  ;;  %v1894_v63 = vld [vmem:[%s2016_s4] ss:$0 sm:$0xff] }
 0x119   :  { %v309_v6 = vpack.c.bf16 %v241_v3, %v238_v0 }
 0x11a   :  { %1463 = vmatpush3.bf16.msra.mxu1 %v1534_v53 }
 0x11b   :  { %1392 = vmatprep.mubr.bf16.mxu1 %v309_v6  ;;  %1464 = vmatprep.subr.bf16.mxu1 %v1535_v58 }
 0x11c   :  { %1393 = vmatmul.mubr.bf16.gmra.mrb[16].mxu1 %v310_v2 }
 0x11d   :  { %v1350_v7 = vpop.f32.mrb[20].mxu0 }
 0x11e   :  { %v254_v8 = vpop.f32.mrb[21].mxu0  ;;  %1465 = vmatpush3.bf16.msra.mxu1 %v1535_v58 }
 0x11f   :  { %v1351_v9 = vpop.f32.mrb[22].mxu0  ;;  %1466 = vmatprep.subr.bf16.mxu1 %v1536_v59 }
 0x120   :  { %v312_v10 = vpack.c.bf16 %v1351_v9, %v1350_v7  ;;  %v257_v11 = vpop.f32.mrb[23].mxu0 }
 0x121   :  { %v311_v12 = vpack.c.bf16 %v257_v11, %v254_v8 }
 0x122   :  { %1467 = vmatpush3.bf16.msra.mxu1 %v1536_v59 }
 0x123   :  { %1396 = vmatprep.mubr.bf16.mxu1 %v311_v12  ;;  %1468 = vmatprep.subr.bf16.mxu1 %v1537_v62 }
 0x124   :  { %1397 = vmatmul.mubr.bf16.gmra.mrb[20].mxu1 %v312_v10 }
 0x125   :  { %v1354_v13 = vpop.f32.mrb[24].mxu0 }
 0x126   :  { %v270_v16 = vpop.f32.mrb[25].mxu0  ;;  %1469 = vmatpush3.bf16.msra.mxu1 %v1537_v62 }
 0x127   :  { %v1355_v19 = vpop.f32.mrb[26].mxu0 }
 0x128   :  { %v314_v20 = vpack.c.bf16 %v1355_v19, %v1354_v13  ;;  %v273_v21 = vpop.f32.mrb[27].mxu0 }
 0x129   :  { %v313_v24 = vpack.c.bf16 %v273_v21, %v270_v16 }
 0x12b   :  { %1400 = vmatprep.mubr.bf16.mxu1 %v313_v24 }
 0x12c   :  { %1401 = vmatmul.mubr.bf16.gmra.mrb[24].mxu1 %v314_v20 }
 0x12d   :  { %v1358_v27 = vpop.f32.mrb[28].mxu0 }
 0x12e   :  { %v286_v28 = vpop.f32.mrb[29].mxu0 }
 0x12f   :  { %v1359_v29 = vpop.f32.mrb[30].mxu0 }
 0x130   :  { %v316_v34 = vpack.c.bf16 %v1359_v29, %v1358_v27  ;;  %v289_v35 = vpop.f32.mrb[31].mxu0 }
 0x131   :  { %v315_v40 = vpack.c.bf16 %v289_v35, %v286_v28 }
 0x133   :  { %1404 = vmatprep.mubr.bf16.mxu1 %v315_v40 }
 0x134   :  { %1405 = vmatmul.mubr.bf16.gmra.mrb[28].mxu1 %v316_v34 }
 0x1cf   :  { %v1378_v0 = vpop.f32.mrb[0].mxu1 }
 0x1d0   :  { %v431_v1 = vadd.f32 %v1378_v0, %v1894_v63  ;;  %v422_v2 = vpop.f32.mrb[1].mxu1 }
 0x1d1   :  { %v423_v3 = vadd.f32 %v1894_v63, %v422_v2  ;;  %v1379_v6 = vpop.f32.mrb[2].mxu1 }
 0x1d2   :  { %v434_v7 = vadd.f32 %v1379_v6, %v1894_v63  ;;  %v425_v8 = vpop.f32.mrb[3].mxu1  ;;  %v551_v10 = vmax.f32 %v431_v1, 0.0 }
 0x1d3   :  { %v426_v9 = vadd.f32 %v1894_v63, %v425_v8  ;;  %v549_v12 = vmax.f32 %v423_v3, 0.0 }
 0x1d4   :  { %v552_v11 = vmax.f32 %v434_v7, 0.0 }
 0x1d5   :  { %v550_v13 = vmax.f32 %v426_v9, 0.0 }
 0x1d6   :  { %v582_v16 = vpack.c.bf16 %v552_v11, %v551_v10 }
 0x1d7   :  { %v581_v19 = vpack.c.bf16 %v550_v13, %v549_v12  ;;  %v1382_v20 = vpop.f32.mrb[4].mxu1 }
 0x1d8   :  { %v447_v21 = vadd.f32 %v1382_v20, %v1894_v63  ;;  %v438_v24 = vpop.f32.mrb[5].mxu1 }
 0x1d9   :  { %v439_v27 = vadd.f32 %v1894_v63, %v438_v24  ;;  %v1383_v28 = vpop.f32.mrb[6].mxu1  ;;  %1424 = vmatprep.mubr.bf16.mxu0 %v581_v19 }
 0x1da   :  { %v450_v29 = vadd.f32 %v1383_v28, %v1894_v63  ;;  %v441_v34 = vpop.f32.mrb[7].mxu1  ;;  %1425 = vmatmul.mubr.bf16.vlgmr.msra.gmra.mrb[32].mxu0 %v582_v16  ;;  %v555_v40 = vmax.f32 %v447_v21, 0.0 }
 0x1db   :  { %v442_v35 = vadd.f32 %v1894_v63, %v441_v34  ;;  %v553_v46 = vmax.f32 %v439_v27, 0.0 }
 0x1dc   :  { %v556_v41 = vmax.f32 %v450_v29, 0.0 }
 0x1dd   :  { %v554_v47 = vmax.f32 %v442_v35, 0.0 }
 0x1de   :  { %v584_v52 = vpack.c.bf16 %v556_v41, %v555_v40 }
 0x1df   :  { %v583_v53 = vpack.c.bf16 %v554_v47, %v553_v46  ;;  %v1386_v58 = vpop.f32.mrb[8].mxu1 }
 0x1e0   :  { %v463_v59 = vadd.f32 %v1386_v58, %v1894_v63  ;;  %v454_v62 = vpop.f32.mrb[9].mxu1 }
 0x1e1   :  { %v455_v0 = vadd.f32 %v1894_v63, %v454_v62  ;;  %v1387_v1 = vpop.f32.mrb[10].mxu1  ;;  %1428 = vmatprep.mubr.bf16.mxu0 %v583_v53 }
 0x1e2   :  { %v466_v2 = vadd.f32 %v1387_v1, %v1894_v63  ;;  %v457_v3 = vpop.f32.mrb[11].mxu1  ;;  %1429 = vmatmul.mubr.bf16.gmra.mrb[36].mxu0 %v584_v52  ;;  %v559_v7 = vmax.f32 %v463_v59, 0.0 }
 0x1e3   :  { %v458_v6 = vadd.f32 %v1894_v63, %v457_v3  ;;  %v557_v9 = vmax.f32 %v455_v0, 0.0 }
 0x1e4   :  { %v560_v8 = vmax.f32 %v466_v2, 0.0 }
 0x1e5   :  { %v558_v10 = vmax.f32 %v458_v6, 0.0 }
 0x1e6   :  { %v586_v11 = vpack.c.bf16 %v560_v8, %v559_v7 }
 0x1e7   :  { %v585_v12 = vpack.c.bf16 %v558_v10, %v557_v9  ;;  %v1390_v13 = vpop.f32.mrb[12].mxu1 }
 0x1e8   :  { %v479_v16 = vadd.f32 %v1390_v13, %v1894_v63  ;;  %v470_v19 = vpop.f32.mrb[13].mxu1 }
 0x1e9   :  { %v471_v20 = vadd.f32 %v1894_v63, %v470_v19  ;;  %v1391_v21 = vpop.f32.mrb[14].mxu1  ;;  %1432 = vmatprep.mubr.bf16.mxu0 %v585_v12 }
 0x1ea   :  { %v482_v24 = vadd.f32 %v1391_v21, %v1894_v63  ;;  %v473_v27 = vpop.f32.mrb[15].mxu1  ;;  %1433 = vmatmul.mubr.bf16.gmra.mrb[40].mxu0 %v586_v11  ;;  %v563_v29 = vmax.f32 %v479_v16, 0.0 }
 0x1eb   :  { %v474_v28 = vadd.f32 %v1894_v63, %v473_v27  ;;  %v561_v35 = vmax.f32 %v471_v20, 0.0 }
 0x1ec   :  { %v564_v34 = vmax.f32 %v482_v24, 0.0 }
 0x1ed   :  { %v562_v40 = vmax.f32 %v474_v28, 0.0 }
 0x1ee   :  { %v588_v41 = vpack.c.bf16 %v564_v34, %v563_v29 }
 0x1ef   :  { %v587_v46 = vpack.c.bf16 %v562_v40, %v561_v35  ;;  %v1394_v47 = vpop.f32.mrb[16].mxu1 }
 0x1f0   :  { %v495_v52 = vadd.f32 %v1394_v47, %v1894_v63  ;;  %v486_v53 = vpop.f32.mrb[17].mxu1 }
 0x1f1   :  { %v487_v58 = vadd.f32 %v1894_v63, %v486_v53  ;;  %v1395_v59 = vpop.f32.mrb[18].mxu1  ;;  %1436 = vmatprep.mubr.bf16.mxu0 %v587_v46 }
 0x1f2   :  { %v498_v62 = vadd.f32 %v1395_v59, %v1894_v63  ;;  %v489_v0 = vpop.f32.mrb[19].mxu1  ;;  %1437 = vmatmul.mubr.bf16.gmra.mrb[44].mxu0 %v588_v41  ;;  %v567_v2 = vmax.f32 %v495_v52, 0.0 }
 0x1f3   :  { %v490_v1 = vadd.f32 %v1894_v63, %v489_v0  ;;  %v565_v6 = vmax.f32 %v487_v58, 0.0 }
 0x1f4   :  { %v568_v3 = vmax.f32 %v498_v62, 0.0 }
 0x1f5   :  { %v566_v7 = vmax.f32 %v490_v1, 0.0 }
 0x1f6   :  { %v590_v8 = vpack.c.bf16 %v568_v3, %v567_v2 }
 0x1f7   :  { %v589_v9 = vpack.c.bf16 %v566_v7, %v565_v6  ;;  %v1398_v10 = vpop.f32.mrb[20].mxu1 }
 0x1f8   :  { %v511_v11 = vadd.f32 %v1398_v10, %v1894_v63  ;;  %v502_v12 = vpop.f32.mrb[21].mxu1 }
 0x1f9   :  { %v503_v13 = vadd.f32 %v1894_v63, %v502_v12  ;;  %v1399_v16 = vpop.f32.mrb[22].mxu1  ;;  %1440 = vmatprep.mubr.bf16.mxu0 %v589_v9 }
 0x1fa   :  { %v514_v19 = vadd.f32 %v1399_v16, %v1894_v63  ;;  %v505_v20 = vpop.f32.mrb[23].mxu1  ;;  %1441 = vmatmul.mubr.bf16.gmra.mrb[48].mxu0 %v590_v8  ;;  %v571_v24 = vmax.f32 %v511_v11, 0.0 }
 0x1fb   :  { %v506_v21 = vadd.f32 %v1894_v63, %v505_v20  ;;  %v569_v28 = vmax.f32 %v503_v13, 0.0 }
 0x1fc   :  { %v572_v27 = vmax.f32 %v514_v19, 0.0 }
 0x1fd   :  { %v570_v29 = vmax.f32 %v506_v21, 0.0 }
 0x1fe   :  { %v592_v34 = vpack.c.bf16 %v572_v27, %v571_v24 }
 0x1ff   :  { %v591_v35 = vpack.c.bf16 %v570_v29, %v569_v28  ;;  %v1402_v40 = vpop.f32.mrb[24].mxu1  ;;  %v1538_v29 = vld [vmem:[%s2014_s2 + $0x38] sm:$0xff]   ;;  %s1563_s2 = smov [#allocation2]  }
 0x200   :  { %v527_v41 = vadd.f32 %v1402_v40, %v1894_v63  ;;  %v518_v46 = vpop.f32.mrb[25].mxu1  ;;  %1470 = vmatprep.subr.bf16.mxu1 %v1538_v29 }
 0x201   :  { %v519_v47 = vadd.f32 %v1894_v63, %v518_v46  ;;  %v1403_v52 = vpop.f32.mrb[26].mxu1  ;;  %1444 = vmatprep.mubr.bf16.mxu0 %v591_v35  ;;  %1471 = vmatpush3.bf16.msra.mxu1 %v1538_v29  ;;  %v1934_v35 = vld [vmem:[%s2018_s6] ss:$0 sm:$0xff]  ;;  %s1171_s6 = sshll.u32 %s1563_s2, 4  ;;  %s1172_s6 = int_to_ptr.vmem [resolvable:$true] %s1171_s6 }
 0x202   :  { %v530_v53 = vadd.f32 %v1403_v52, %v1894_v63  ;;  %v521_v58 = vpop.f32.mrb[27].mxu1  ;;  %1445 = vmatmul.mubr.bf16.gmra.mrb[52].mxu0 %v592_v34  ;;  %v575_v62 = vmax.f32 %v527_v41, 0.0  ;;  %s1539_s8 = scalar_lea.vmem %s1172_s6, 4096  ;;  %p1544_p1 = scmp.lt.s32.totalorder %s1172_s6, %s1172_s6 }
 0x203   :  { %v522_v59 = vadd.f32 %v1894_v63, %v521_v58  ;;  %v573_v1 = vmax.f32 %v519_v47, 0.0  ;;  %p1540_p0 = scmp.ne.s32.totalorder %s1172_s6, %s1539_s8  ;;  %p1545_p2 = scmp.lt.s32.totalorder %s1539_s8, %s1539_s8 }
 0x204   :  { %v576_v0 = vmax.f32 %v530_v53, 0.0 }
 0x205   :  { %v574_v2 = vmax.f32 %v522_v59, 0.0  ;;  %p1546_p3 = por %p1545_p2, %p1544_p1 }
 0x206   :  { %v594_v3 = vpack.c.bf16 %v576_v0, %v575_v62 }
 0x207   :  { %v593_v6 = vpack.c.bf16 %v574_v2, %v573_v1  ;;  %v1406_v7 = vpop.f32.mrb[28].mxu1  ;;  %p1547_p4 = pnand %p1546_p3, %p1540_p0 }
 0x208   :  { %v543_v8 = vadd.f32 %v1406_v7, %v1894_v63  ;;  %v534_v9 = vpop.f32.mrb[29].mxu1 }
 0x209   :  { %v535_v10 = vadd.f32 %v1894_v63, %v534_v9  ;;  %v1407_v11 = vpop.f32.mrb[30].mxu1  ;;  %1448 = vmatprep.mubr.bf16.mxu0 %v593_v6 }
 0x20a   :  { %v546_v12 = vadd.f32 %v1407_v11, %v1894_v63  ;;  %v537_v13 = vpop.f32.mrb[31].mxu1  ;;  %1449 = vmatmul.mubr.bf16.gmra.mrb[56].mxu0 %v594_v3  ;;  %v579_v19 = vmax.f32 %v543_v8, 0.0 }
 0x20b   :  { %v538_v16 = vadd.f32 %v1894_v63, %v537_v13  ;;  %v577_v21 = vmax.f32 %v535_v10, 0.0 }
 0x20c   :  { %v580_v20 = vmax.f32 %v546_v12, 0.0 }
 0x20d   :  { %v578_v24 = vmax.f32 %v538_v16, 0.0 }
 0x20e   :  { %v596_v27 = vpack.c.bf16 %v580_v20, %v579_v19 }
 0x20f   :  { %v595_v28 = vpack.c.bf16 %v578_v24, %v577_v21 }
 0x211   :  { %1452 = vmatprep.mubr.bf16.mxu0 %v595_v28 }
 0x212   :  { %1453 = vmatmul.mubr.bf16.gmra.mrb[60].mxu0 %v596_v27 }
 0x2ad   :  { %v1426_v34 = vpop.f32.mrb[32].mxu0 }
 0x2ae   :  { %v702_v63 = vpop.f32.mrb[33].mxu0  ;;  %v711_v41 = vadd.f32 %v1426_v34, %v1934_v35 }
 0x2af   :  { %v1427_v40 = vpop.f32.mrb[34].mxu0  ;;  %v703_v52 = vadd.f32 %v1934_v35, %v702_v63 }
 0x2b0   :  { %v714_v46 = vadd.f32 %v1427_v40, %v1934_v35  ;;  %v705_v47 = vpop.f32.mrb[35].mxu0 }
 0x2b1   :  { %v706_v53 = vadd.f32 %v1934_v35, %v705_v47 }
 0x2b2   :  { %v830_v58 = vpack.c.bf16 %v714_v46, %v711_v41 }
 0x2b3   :  { %v829_v59 = vpack.c.bf16 %v706_v53, %v703_v52 }
 0x2b5   :  { %v1430_v62 = vpop.f32.mrb[36].mxu0  ;;  %1472 = vmatprep.mubr.bf16.mxu1 %v829_v59 }
 0x2b6   :  { %v718_v0 = vpop.f32.mrb[37].mxu0  ;;  %1473 = vmatmul.mubr.bf16.vlgmr.msra.gmra.mrb[32].mxu1 %v830_v58  ;;  %v727_v2 = vadd.f32 %v1430_v62, %v1934_v35 }
 0x2b7   :  { %v1431_v1 = vpop.f32.mrb[38].mxu0  ;;  %v719_v7 = vadd.f32 %v1934_v35, %v718_v0 }
 0x2b8   :  { %v730_v3 = vadd.f32 %v1431_v1, %v1934_v35  ;;  %v721_v6 = vpop.f32.mrb[39].mxu0 }
 0x2b9   :  { %v722_v8 = vadd.f32 %v1934_v35, %v721_v6 }
 0x2ba   :  { %v832_v9 = vpack.c.bf16 %v730_v3, %v727_v2 }
 0x2bb   :  { %v831_v10 = vpack.c.bf16 %v722_v8, %v719_v7 }
 0x2bd   :  { %v1434_v11 = vpop.f32.mrb[40].mxu0  ;;  %1476 = vmatprep.mubr.bf16.mxu1 %v831_v10 }
 0x2be   :  { %v734_v12 = vpop.f32.mrb[41].mxu0  ;;  %1477 = vmatmul.mubr.bf16.gmra.mrb[36].mxu1 %v832_v9  ;;  %v743_v16 = vadd.f32 %v1434_v11, %v1934_v35 }
 0x2bf   :  { %v1435_v13 = vpop.f32.mrb[42].mxu0  ;;  %v735_v21 = vadd.f32 %v1934_v35, %v734_v12 }
 0x2c0   :  { %v746_v19 = vadd.f32 %v1435_v13, %v1934_v35  ;;  %v737_v20 = vpop.f32.mrb[43].mxu0 }
 0x2c1   :  { %v738_v24 = vadd.f32 %v1934_v35, %v737_v20 }
 0x2c2   :  { %v834_v27 = vpack.c.bf16 %v746_v19, %v743_v16 }
 0x2c3   :  { %v833_v28 = vpack.c.bf16 %v738_v24, %v735_v21 }
 0x2c5   :  { %v1438_v29 = vpop.f32.mrb[44].mxu0  ;;  %1480 = vmatprep.mubr.bf16.mxu1 %v833_v28 }
 0x2c6   :  { %v750_v34 = vpop.f32.mrb[45].mxu0  ;;  %1481 = vmatmul.mubr.bf16.gmra.mrb[40].mxu1 %v834_v27  ;;  %v759_v40 = vadd.f32 %v1438_v29, %v1934_v35 }
 0x2c7   :  { %v1439_v63 = vpop.f32.mrb[46].mxu0  ;;  %v751_v47 = vadd.f32 %v1934_v35, %v750_v34 }
 0x2c8   :  { %v762_v41 = vadd.f32 %v1439_v63, %v1934_v35  ;;  %v753_v46 = vpop.f32.mrb[47].mxu0 }
 0x2c9   :  { %v754_v52 = vadd.f32 %v1934_v35, %v753_v46 }
 0x2ca   :  { %v836_v53 = vpack.c.bf16 %v762_v41, %v759_v40 }
 0x2cb   :  { %v835_v58 = vpack.c.bf16 %v754_v52, %v751_v47 }
 0x2cd   :  { %v1442_v59 = vpop.f32.mrb[48].mxu0  ;;  %1484 = vmatprep.mubr.bf16.mxu1 %v835_v58 }
 0x2ce   :  { %v766_v62 = vpop.f32.mrb[49].mxu0  ;;  %1485 = vmatmul.mubr.bf16.gmra.mrb[44].mxu1 %v836_v53  ;;  %v775_v1 = vadd.f32 %v1442_v59, %v1934_v35 }
 0x2cf   :  { %v1443_v0 = vpop.f32.mrb[50].mxu0  ;;  %v767_v6 = vadd.f32 %v1934_v35, %v766_v62 }
 0x2d0   :  { %v778_v2 = vadd.f32 %v1443_v0, %v1934_v35  ;;  %v769_v3 = vpop.f32.mrb[51].mxu0 }
 0x2d1   :  { %v770_v7 = vadd.f32 %v1934_v35, %v769_v3 }
 0x2d2   :  { %v838_v8 = vpack.c.bf16 %v778_v2, %v775_v1 }
 0x2d3   :  { %v837_v9 = vpack.c.bf16 %v770_v7, %v767_v6 }
 0x2d5   :  { %v1446_v10 = vpop.f32.mrb[52].mxu0  ;;  %1488 = vmatprep.mubr.bf16.mxu1 %v837_v9 }
 0x2d6   :  { %v782_v11 = vpop.f32.mrb[53].mxu0  ;;  %1489 = vmatmul.mubr.bf16.gmra.mrb[48].mxu1 %v838_v8  ;;  %v791_v13 = vadd.f32 %v1446_v10, %v1934_v35 }
 0x2d7   :  { %v1447_v12 = vpop.f32.mrb[54].mxu0  ;;  %v783_v20 = vadd.f32 %v1934_v35, %v782_v11 }
 0x2d8   :  { %v794_v16 = vadd.f32 %v1447_v12, %v1934_v35  ;;  %v785_v19 = vpop.f32.mrb[55].mxu0 }
 0x2d9   :  { %v786_v21 = vadd.f32 %v1934_v35, %v785_v19 }
 0x2da   :  { %v840_v24 = vpack.c.bf16 %v794_v16, %v791_v13 }
 0x2db   :  { %v839_v27 = vpack.c.bf16 %v786_v21, %v783_v20 }
 0x2dd   :  { %v1450_v28 = vpop.f32.mrb[56].mxu0  ;;  %1492 = vmatprep.mubr.bf16.mxu1 %v839_v27 }
 0x2de   :  { %v798_v29 = vpop.f32.mrb[57].mxu0  ;;  %1493 = vmatmul.mubr.bf16.gmra.mrb[52].mxu1 %v840_v24  ;;  %v807_v63 = vadd.f32 %v1450_v28, %v1934_v35 }
 0x2df   :  { %v1451_v34 = vpop.f32.mrb[58].mxu0  ;;  %v799_v46 = vadd.f32 %v1934_v35, %v798_v29 }
 0x2e0   :  { %v810_v40 = vadd.f32 %v1451_v34, %v1934_v35  ;;  %v801_v41 = vpop.f32.mrb[59].mxu0 }
 0x2e1   :  { %v802_v47 = vadd.f32 %v1934_v35, %v801_v41 }
 0x2e2   :  { %v842_v52 = vpack.c.bf16 %v810_v40, %v807_v63 }
 0x2e3   :  { %v841_v53 = vpack.c.bf16 %v802_v47, %v799_v46 }
 0x2e5   :  { %v1454_v58 = vpop.f32.mrb[60].mxu0  ;;  %1496 = vmatprep.mubr.bf16.mxu1 %v841_v53 }
 0x2e6   :  { %v814_v59 = vpop.f32.mrb[61].mxu0  ;;  %1497 = vmatmul.mubr.bf16.gmra.mrb[56].mxu1 %v842_v52  ;;  %v823_v0 = vadd.f32 %v1454_v58, %v1934_v35 }
 0x2e7   :  { %v1455_v62 = vpop.f32.mrb[62].mxu0  ;;  %v815_v3 = vadd.f32 %v1934_v35, %v814_v59 }
 0x2e8   :  { %v826_v1 = vadd.f32 %v1455_v62, %v1934_v35  ;;  %v817_v2 = vpop.f32.mrb[63].mxu0 }
 0x2e9   :  { %v818_v6 = vadd.f32 %v1934_v35, %v817_v2 }
 0x2ea   :  { %v844_v7 = vpack.c.bf16 %v826_v1, %v823_v0 }
 0x2eb   :  { %v843_v8 = vpack.c.bf16 %v818_v6, %v815_v3 }
 0x2ed   :  { %1500 = vmatprep.mubr.bf16.mxu1 %v843_v8 }
 0x2ee   :  { %1501 = vmatmul.mubr.bf16.gmra.mrb[60].mxu1 %v844_v7 }
 0x389   :  { %v1474_v9 = vpop.f32.mrb[32].mxu1 }
 0x38a   :  { %v1104_v10 = vsel %vm1072_vm0, -1e+10, %v1474_v9  ;;  %v943_v11 = vpop.f32.mrb[33].mxu1  ;;  %vm1088_vm0 = vcmp.gt.f32.partialorder %v1762_v42, 0.0 }
 0x38b   :  { %1136 = vst [vmem:[#allocation2 + $0x10] sm:$0xff] %v1104_v10  ;;  %v1102_v12 = vsel %vm1070_vm1, -1e+10, %v943_v11  ;;  %v1475_v13 = vpop.f32.mrb[34].mxu1  ;;  %vm1086_vm1 = vcmp.gt.f32.partialorder %v1748_v38, 0.0 }
 0x38c   :  { %1134 = vst [vmem:[#allocation2] sm:$0xff] %v1102_v12  ;;  %v1105_v35 = vsel %vm1073_vm2, -1e+10, %v1475_v13  ;;  %v946_v16 = vpop.f32.mrb[35].mxu1  ;;  %vm1089_vm2 = vcmp.gt.f32.partialorder %v1767_v43, 0.0 }
 0x38d   :  { %1137 = vst [vmem:[#allocation2 + $0x18] sm:$0xff] %v1105_v35  ;;  %v1103_v19 = vsel %vm1071_vm3, -1e+10, %v946_v16  ;;  %vm1087_vm3 = vcmp.gt.f32.partialorder %v1753_v39, 0.0 }
 0x38e   :  { %1135 = vst [vmem:[#allocation2 + $0x8] sm:$0xff] %v1103_v19 }
 0x391   :  { %v1478_v4 = vpop.f32.mrb[36].mxu1 }
 0x392   :  { %v1108_v14 = vsel %vm1076_vm4, -1e+10, %v1478_v4  ;;  %v959_v15 = vpop.f32.mrb[37].mxu1  ;;  %vm1092_vm4 = vcmp.gt.f32.partialorder %v1786_v48, 0.0 }
 0x393   :  { %1140 = vst [vmem:[#allocation2 + $0x30] sm:$0xff] %v1108_v14  ;;  %v1106_v5 = vsel %vm1074_vm5, -1e+10, %v959_v15  ;;  %v1479_v20 = vpop.f32.mrb[38].mxu1  ;;  %vm1090_vm5 = vcmp.gt.f32.partialorder %v1772_v44, 0.0 }
 0x394   :  { %1138 = vst [vmem:[#allocation2 + $0x20] sm:$0xff] %v1106_v5  ;;  %v1109_v21 = vsel %vm1077_vm6, -1e+10, %v1479_v20  ;;  %v962_v24 = vpop.f32.mrb[39].mxu1  ;;  %vm1093_vm6 = vcmp.gt.f32.partialorder %v1791_v49, 0.0 }
 0x395   :  { %1141 = vst [vmem:[#allocation2 + $0x38] sm:$0xff] %v1109_v21  ;;  %v1107_v27 = vsel %vm1075_vm7, -1e+10, %v962_v24  ;;  %vm1091_vm7 = vcmp.gt.f32.partialorder %v1777_v45, 0.0 }
 0x396   :  { %1139 = vst [vmem:[#allocation2 + $0x28] sm:$0xff] %v1107_v27 }
 0x399   :  { %v1482_v17 = vpop.f32.mrb[40].mxu1 }
 0x39a   :  { %v1112_v22 = vsel %vm1080_vm8, -1e+10, %v1482_v17  ;;  %v975_v23 = vpop.f32.mrb[41].mxu1  ;;  %vm1096_vm8 = vcmp.gt.f32.partialorder %v1810_v54, 0.0 }
 0x39b   :  { %1144 = vst [vmem:[#allocation2 + $0x50] sm:$0xff] %v1112_v22  ;;  %v1110_v18 = vsel %vm1078_vm9, -1e+10, %v975_v23  ;;  %v1483_v28 = vpop.f32.mrb[42].mxu1  ;;  %vm1094_vm9 = vcmp.gt.f32.partialorder %v1796_v50, 0.0 }
 0x39c   :  { %1142 = vst [vmem:[#allocation2 + $0x40] sm:$0xff] %v1110_v18  ;;  %v1113_v29 = vsel %vm1081_vm10, -1e+10, %v1483_v28  ;;  %v978_v34 = vpop.f32.mrb[43].mxu1  ;;  %vm1097_vm10 = vcmp.gt.f32.partialorder %v1815_v55, 0.0 }
 0x39d   :  { %1145 = vst [vmem:[#allocation2 + $0x58] sm:$0xff] %v1113_v29  ;;  %v1111_v63 = vsel %vm1079_vm11, -1e+10, %v978_v34  ;;  %vm1095_vm11 = vcmp.gt.f32.partialorder %v1801_v51, 0.0 }
 0x39e   :  { %1143 = vst [vmem:[#allocation2 + $0x48] sm:$0xff] %v1111_v63 }
 0x3a1   :  { %v1486_v25 = vpop.f32.mrb[44].mxu1 }
 0x3a2   :  { %v1116_v30 = vsel %vm1084_vm12, -1e+10, %v1486_v25  ;;  %v991_v31 = vpop.f32.mrb[45].mxu1  ;;  %vm1100_vm12 = vcmp.gt.f32.partialorder %v1834_v60, 0.0 }
 0x3a3   :  { %1148 = vst [vmem:[#allocation2 + $0x70] sm:$0xff] %v1116_v30  ;;  %v1114_v26 = vsel %vm1082_vm13, -1e+10, %v991_v31  ;;  %v1487_v40 = vpop.f32.mrb[46].mxu1  ;;  %vm1098_vm13 = vcmp.gt.f32.partialorder %v1820_v56, 0.0 }
 0x3a4   :  { %1146 = vst [vmem:[#allocation2 + $0x60] sm:$0xff] %v1114_v26  ;;  %v1117_v41 = vsel %vm1085_vm14, -1e+10, %v1487_v40  ;;  %v994_v46 = vpop.f32.mrb[47].mxu1  ;;  %vm1101_vm14 = vcmp.gt.f32.partialorder %v1839_v61, 0.0 }
 0x3a5   :  { %1149 = vst [vmem:[#allocation2 + $0x78] sm:$0xff] %v1117_v41  ;;  %v1115_v47 = vsel %vm1083_vm15, -1e+10, %v994_v46  ;;  %vm1099_vm15 = vcmp.gt.f32.partialorder %v1825_v57, 0.0 }
 0x3a6   :  { %1147 = vst [vmem:[#allocation2 + $0x68] sm:$0xff] %v1115_v47 }
 0x3a9   :  { %v1490_v32 = vpop.f32.mrb[48].mxu1 }
 0x3aa   :  { %v1120_v36 = vsel %vm1088_vm0, -1e+10, %v1490_v32  ;;  %v1007_v37 = vpop.f32.mrb[49].mxu1 }
 0x3ab   :  { %1152 = vst [vmem:[#allocation2 + $0x90] sm:$0xff] %v1120_v36  ;;  %v1118_v33 = vsel %vm1086_vm1, -1e+10, %v1007_v37  ;;  %v1491_v52 = vpop.f32.mrb[50].mxu1 }
 0x3ac   :  { %1150 = vst [vmem:[#allocation2 + $0x80] sm:$0xff] %v1118_v33  ;;  %v1121_v53 = vsel %vm1089_vm2, -1e+10, %v1491_v52  ;;  %v1010_v58 = vpop.f32.mrb[51].mxu1 }
 0x3ad   :  { %1153 = vst [vmem:[#allocation2 + $0x98] sm:$0xff] %v1121_v53  ;;  %v1119_v59 = vsel %vm1087_vm3, -1e+10, %v1010_v58 }
 0x3ae   :  { %1151 = vst [vmem:[#allocation2 + $0x88] sm:$0xff] %v1119_v59 }
 0x3b1   :  { %v1494_v38 = vpop.f32.mrb[52].mxu1 }
 0x3b2   :  { %v1124_v42 = vsel %vm1092_vm4, -1e+10, %v1494_v38  ;;  %v1023_v43 = vpop.f32.mrb[53].mxu1 }
 0x3b3   :  { %1156 = vst [vmem:[#allocation2 + $0xb0] sm:$0xff] %v1124_v42  ;;  %v1122_v39 = vsel %vm1090_vm5, -1e+10, %v1023_v43  ;;  %v1495_v62 = vpop.f32.mrb[54].mxu1 }
 0x3b4   :  { %1154 = vst [vmem:[#allocation2 + $0xa0] sm:$0xff] %v1122_v39  ;;  %v1125_v0 = vsel %vm1093_vm6, -1e+10, %v1495_v62  ;;  %v1026_v1 = vpop.f32.mrb[55].mxu1 }
 0x3b5   :  { %1157 = vst [vmem:[#allocation2 + $0xb8] sm:$0xff] %v1125_v0  ;;  %v1123_v2 = vsel %vm1091_vm7, -1e+10, %v1026_v1 }
 0x3b6   :  { %1155 = vst [vmem:[#allocation2 + $0xa8] sm:$0xff] %v1123_v2 }
 0x3b9   :  { %v1498_v44 = vpop.f32.mrb[56].mxu1 }
 0x3ba   :  { %v1128_v48 = vsel %vm1096_vm8, -1e+10, %v1498_v44  ;;  %v1039_v49 = vpop.f32.mrb[57].mxu1 }
 0x3bb   :  { %1160 = vst [vmem:[#allocation2 + $0xd0] sm:$0xff] %v1128_v48  ;;  %v1126_v45 = vsel %vm1094_vm9, -1e+10, %v1039_v49  ;;  %v1499_v3 = vpop.f32.mrb[58].mxu1 }
 0x3bc   :  { %1158 = vst [vmem:[#allocation2 + $0xc0] sm:$0xff] %v1126_v45  ;;  %v1129_v6 = vsel %vm1097_vm10, -1e+10, %v1499_v3  ;;  %v1042_v7 = vpop.f32.mrb[59].mxu1 }
 0x3bd   :  { %1161 = vst [vmem:[#allocation2 + $0xd8] sm:$0xff] %v1129_v6  ;;  %v1127_v8 = vsel %vm1095_vm11, -1e+10, %v1042_v7 }
 0x3be   :  { %1159 = vst [vmem:[#allocation2 + $0xc8] sm:$0xff] %v1127_v8 }
 0x3c1   :  { %v1502_v50 = vpop.f32.mrb[60].mxu1 }
 0x3c2   :  { %v1132_v54 = vsel %vm1100_vm12, -1e+10, %v1502_v50  ;;  %v1055_v51 = vpop.f32.mrb[61].mxu1 }
 0x3c3   :  { %1164 = vst [vmem:[#allocation2 + $0xf0] sm:$0xff] %v1132_v54  ;;  %v1130_v55 = vsel %vm1098_vm13, -1e+10, %v1055_v51  ;;  %v1503_v9 = vpop.f32.mrb[62].mxu1 }
 0x3c4   :  { %1162 = vst [vmem:[#allocation2 + $0xe0] sm:$0xff] %v1130_v55  ;;  %v1133_v10 = vsel %vm1101_vm14, -1e+10, %v1503_v9  ;;  %v1058_v11 = vpop.f32.mrb[63].mxu1 }
 0x3c5   :  { %1165 = vst [vmem:[#allocation2 + $0xf8] sm:$0xff] %v1133_v10  ;;  %v1131_v60 = vsel %vm1099_vm15, -1e+10, %v1058_v11 }
 0x3c6   :  { %1163 = vst [vmem:[#allocation2 + $0xe8] sm:$0xff] %v1131_v60 }
 0x3c7   :  { %1550 = shalt.err (!%p1547_p4)
}
 0x3c8   :  { %s1551_s11 = scalar_lea.hbm %s2019_s7, 4096 }
 0x3c9   :  { %p1552_p5 = scmp.ne.s32.totalorder %s2019_s7, %s1551_s11  ;;  %p1555_p6 = scmp.lt.u32.totalorder %s1551_s11, %s2019_s7 }
 0x3cb   :  { %p1557_p7 = pnand %p1555_p6, %p1552_p5 }
 0x3cd   :  { %1560 = shalt.err (!%p1557_p7)
}
 0x3ce   :  { %s1564_s15 = smov 128   ;;  %s1565_s16 = smov 8  }
 0x3cf   :  { %1177 = dma.vmem_to_hbm [thread:$0]  %s1172_s6, 4096, %s2019_s7, [#allocation3], %s1564_s15, %s1564_s15, %s1565_s16  }
 0x3d0   :  { %1561 = dma.done.wait [#allocation3], 4096  }
 0x3d1   :  { %1562 = vsyncadd [#allocation3], 4294963200 }
 0x3d2   :  { %1181 = vsyncpa [#allocation3], 1 }

</bundles_post_ra>
